<compile_context>
chip_gen: v6e
topology: v6e:2x2x1
jax: 0.10.0
libtpu: 0.0.40
codegen_flags: <defaults>
</compile_context>

<pallas_src>
import functools

import jax
import jax.numpy as jnp
from jax import lax
from jax.experimental import pallas as pl
from jax.experimental.pallas import tpu as pltpu

HIDDEN = 256          # fixed by the PyTorch module (Linear(input_dim, 256) ...)
_EPS = 1e-12          # F.normalize default eps


def _round_up(x: int, m: int) -> int:
    return (x + m - 1) // m * m


def _shallownet_kernel(x_ref, w1_ref, b1_ref, a1_ref, w2_ref, b2_ref, a2_ref,
                       w3_ref, b3_ref, o_ref, acc_ref):
    """Fused: L2normalize(prelu(prelu(x@W1+b1)@W2+b2)@W3+b3), K-tiled over W1."""
    k = pl.program_id(1)

    @pl.when(k == 0)
    def _():
        acc_ref[...] = jnp.zeros_like(acc_ref)

    # Layer-1 partial product for this K tile (f32 accumulate on the MXU).
    acc_ref[...] += jnp.dot(x_ref[...], w1_ref[...],
                            preferred_element_type=jnp.float32)

    @pl.when(k == pl.num_programs(1) - 1)
    def _():
        # Layer 1 epilogue: bias + PReLU.
        h1 = acc_ref[...] + b1_ref[...]
        h1 = jnp.where(h1 >= 0.0, h1, a1_ref[...] * h1)
        # Layer 2: Linear + PReLU (w2/b2/a2 resident in VMEM across grid steps).
        h2 = jnp.dot(h1, w2_ref[...], preferred_element_type=jnp.float32) + b2_ref[...]
        h2 = jnp.where(h2 >= 0.0, h2, a2_ref[...] * h2)
        # Layer 3: Linear (output padded to a 128-lane multiple -> unmasked vst).
        out = jnp.dot(h2, w3_ref[...], preferred_element_type=jnp.float32) + b3_ref[...]
        # L2 normalize along the feature dim.  Padded columns are exactly zero,
        # so the norm over the padded width equals the norm over output_dim.
        # x * rsqrt(max(sumsq, eps^2)) == x / max(sqrt(sumsq), eps)  (sqrt monotone),
        # and rsqrt runs on the EUP slot instead of a VALU divide.
        sq = jnp.sum(out * out, axis=-1, keepdims=True)
        out = out * lax.rsqrt(jnp.maximum(sq, _EPS * _EPS))
        o_ref[...] = out.astype(o_ref.dtype)


@functools.lru_cache(maxsize=None)
def _build_call(m_pad: int, tm: int, k_pad: int, tk: int, out_pad: int,
                dtype_name: str):
    dtype = jnp.dtype(dtype_name)
    grid = (m_pad // tm, k_pad // tk)
    return pl.pallas_call(
        _shallownet_kernel,
        out_shape=jax.ShapeDtypeStruct((m_pad, out_pad), dtype),
        grid_spec=pltpu.PrefetchScalarGridSpec(
            num_scalar_prefetch=0,
            grid=grid,
            in_specs=[
                pl.BlockSpec((tm, tk), lambda i, k: (i, k)),           # x tile
                pl.BlockSpec((tk, HIDDEN), lambda i, k: (k, 0)),       # w1 K-tile
                pl.BlockSpec((1, HIDDEN), lambda i, k: (0, 0)),        # b1
                pl.BlockSpec((1, HIDDEN), lambda i, k: (0, 0)),        # prelu a1
                pl.BlockSpec((HIDDEN, HIDDEN), lambda i, k: (0, 0)),   # w2
                pl.BlockSpec((1, HIDDEN), lambda i, k: (0, 0)),        # b2
                pl.BlockSpec((1, HIDDEN), lambda i, k: (0, 0)),        # prelu a2
                pl.BlockSpec((HIDDEN, out_pad), lambda i, k: (0, 0)),  # w3 (padded)
                pl.BlockSpec((1, out_pad), lambda i, k: (0, 0)),       # b3 (padded)
            ],
            out_specs=pl.BlockSpec((tm, out_pad), lambda i, k: (i, 0)),
            scratch_shapes=[pltpu.VMEM((tm, HIDDEN), jnp.float32)],    # layer-1 acc
        ),
        compiler_params=pltpu.CompilerParams(
            dimension_semantics=("parallel", "arbitrary"),
            vmem_limit_bytes=32 * 1024 * 1024,   # safe on v5e/v6e/v7x scoped limits
        ),
    )


def _pick_tiles(m: int, in_dim: int, out_dim: int):
    # Batch-row tiling (sublane multiple of 8; cap tile at 256 rows so the
    # pipeline has multiple steps and the MXU sees 256-row LHS blocks).
    if m <= 256:
        m_pad = _round_up(m, 8)
        tm = m_pad
    else:
        m_pad = _round_up(m, 256)
        tm = 256
    # Reduction (input_dim): single K block while it is small enough to sit
    # comfortably in VMEM double-buffered; otherwise 1024-wide K tiles.
    if in_dim <= 2048:
        k_pad = _round_up(in_dim, 128)
        tk = k_pad
    else:
        k_pad = _round_up(in_dim, 1024)
        tk = 1024
    out_pad = _round_up(out_dim, 128)
    return m_pad, tm, k_pad, tk, out_pad


def init_params(key, input_dim: int, output_dim: int):
    """PyTorch-style init: Linear U(-1/sqrt(fan_in), +1/sqrt(fan_in)); PReLU a=0.25."""
    ks = jax.random.split(key, 6)
    s1 = 1.0 / float(input_dim) ** 0.5
    s2 = 1.0 / float(HIDDEN) ** 0.5
    w1 = jax.random.uniform(ks[0], (input_dim, HIDDEN), jnp.float32, -s1, s1)
    b1 = jax.random.uniform(ks[1], (1, HIDDEN), jnp.float32, -s1, s1)
    w2 = jax.random.uniform(ks[2], (HIDDEN, HIDDEN), jnp.float32, -s2, s2)
    b2 = jax.random.uniform(ks[3], (1, HIDDEN), jnp.float32, -s2, s2)
    w3 = jax.random.uniform(ks[4], (HIDDEN, output_dim), jnp.float32, -s2, s2)
    b3 = jax.random.uniform(ks[5], (1, output_dim), jnp.float32, -s2, s2)
    a1 = jnp.full((1, HIDDEN), 0.25, jnp.float32)   # nn.PReLU() default (scalar a)
    a2 = jnp.full((1, HIDDEN), 0.25, jnp.float32)
    return (w1, b1, a1, w2, b2, a2, w3, b3)


@jax.jit
def shallownet_forward(x1, x2, x3, params):
    """ShallowNet.forward(x1, x2, x3): one fused kernel call for all three branches."""
    w1, b1, a1, w2, b2, a2, w3, b3 = params
    B = x1.shape[0]
    in_dim = w1.shape[0]
    out_dim = w3.shape[1]

    # Fuse the three weight-shared branches: stack on the batch axis so the
    # weights are DMA'd to VMEM once and reused for x1, x2 and x3.
    x = jnp.concatenate([x1, x2, x3], axis=0)            # [3B, in_dim]
    m = 3 * B

    m_pad, tm, k_pad, tk, out_pad = _pick_tiles(m, in_dim, out_dim)

    # Zero-pad for sublane (rows) / lane (cols) density and for the K grid.
    x_p = jnp.pad(x, ((0, m_pad - m), (0, k_pad - in_dim)))
    w1_p = jnp.pad(w1, ((0, k_pad - in_dim), (0, 0)))
    w3_p = jnp.pad(w3, ((0, 0), (0, out_pad - out_dim)))
    b3_p = jnp.pad(b3, ((0, 0), (0, out_pad - out_dim)))

    call = _build_call(m_pad, tm, k_pad, tk, out_pad, jnp.dtype(x1.dtype).name)
    out = call(x_p, w1_p, b1, a1, w2, b2, a2, w3_p, b3_p)

    out = out[:m, :out_dim]
    return out[:B], out[B:2 * B], out[2 * B:3 * B]


def shallownet_forward_ref(x1, x2, x3, params):
    """Pure-JAX reference (matches the PyTorch module semantics)."""
    w1, b1, a1, w2, b2, a2, w3, b3 = params

    def prelu(x, a):
        return jnp.where(x >= 0.0, x, a * x)

    def net(x):
        h = prelu(x @ w1 + b1, a1)
        h = prelu(h @ w2 + b2, a2)
        o = h @ w3 + b3
        n = jnp.sqrt(jnp.sum(o * o, axis=1, keepdims=True))
        return o / jnp.maximum(n, _EPS)

    return net(x1), net(x2), net(x3)


if __name__ == "__main__":
    B, INPUT_DIM, OUTPUT_DIM = 2, 128, 32

    key = jax.random.PRNGKey(0)
    k1, k2, k3, kp = jax.random.split(key, 4)
    x1 = jax.random.normal(k1, (B, INPUT_DIM), jnp.float32)
    x2 = jax.random.normal(k2, (B, INPUT_DIM), jnp.float32)
    x3 = jax.random.normal(k3, (B, INPUT_DIM), jnp.float32)
    params = init_params(kp, INPUT_DIM, OUTPUT_DIM)

    o1, o2, o3 = shallownet_forward(x1, x2, x3, params)
    jax.block_until_ready((o1, o2, o3))

    r1, r2, r3 = shallownet_forward_ref(x1, x2, x3, params)
    assert o1.shape == (B, OUTPUT_DIM) and o2.shape == (B, OUTPUT_DIM) and o3.shape == (B, OUTPUT_DIM)
    assert jnp.allclose(o1, r1, atol=1e-4, rtol=1e-4)
    assert jnp.allclose(o2, r2, atol=1e-4, rtol=1e-4)
    assert jnp.allclose(o3, r3, atol=1e-4, rtol=1e-4)
    # Embeddings are L2-normalized along dim=1 (NormalizeLayer).
    assert jnp.allclose(jnp.sum(o1 * o1, axis=1), jnp.ones((B,)), atol=1e-4)

    print("KERNEL_OK")
</pallas_src>

<mosaic_0001>
module attributes {stable_mosaic.version = 11 : i64} {
  func.func @_shallownet_kernel(%arg0: i32, %arg1: i32, %arg2: memref<8x128xf32, #tpu.memory_space<vmem>>, %arg3: memref<128x256xf32, #tpu.memory_space<vmem>>, %arg4: memref<1x256xf32, #tpu.memory_space<vmem>>, %arg5: memref<1x256xf32, #tpu.memory_space<vmem>>, %arg6: memref<256x256xf32, #tpu.memory_space<vmem>>, %arg7: memref<1x256xf32, #tpu.memory_space<vmem>>, %arg8: memref<1x256xf32, #tpu.memory_space<vmem>>, %arg9: memref<256x128xf32, #tpu.memory_space<vmem>>, %arg10: memref<1x128xf32, #tpu.memory_space<vmem>>, %arg11: memref<8x128xf32, #tpu.memory_space<vmem>>, %arg12: memref<8x256xf32, #tpu.memory_space<vmem>>) attributes {dimension_semantics = [#tpu.dimension_semantics<parallel>, #tpu.dimension_semantics<arbitrary>], iteration_bounds = array<i64: 1, 1>, scalar_prefetch = 0 : i64, scratch_operands = 1 : i64, tpu.core_type = #tpu.core_type<tc>, window_params = [{transform_indices = @transform_0, window_bounds = array<i64: 8, 128>}, {transform_indices = @transform_1, window_bounds = array<i64: 128, 256>}, {pipeline_mode = #tpu.pipeline_mode<synchronous>, transform_indices = @transform_2, window_bounds = array<i64: 1, 256>}, {pipeline_mode = #tpu.pipeline_mode<synchronous>, transform_indices = @transform_3, window_bounds = array<i64: 1, 256>}, {pipeline_mode = #tpu.pipeline_mode<synchronous>, transform_indices = @transform_4, window_bounds = array<i64: 256, 256>}, {pipeline_mode = #tpu.pipeline_mode<synchronous>, transform_indices = @transform_5, window_bounds = array<i64: 1, 256>}, {pipeline_mode = #tpu.pipeline_mode<synchronous>, transform_indices = @transform_6, window_bounds = array<i64: 1, 256>}, {pipeline_mode = #tpu.pipeline_mode<synchronous>, transform_indices = @transform_7, window_bounds = array<i64: 256, 128>}, {pipeline_mode = #tpu.pipeline_mode<synchronous>, transform_indices = @transform_8, window_bounds = array<i64: 1, 128>}, {transform_indices = @transform_9, window_bounds = array<i64: 8, 128>}]} {
    %c0_i32 = arith.constant 0 : i32
    %0 = arith.cmpi eq, %arg1, %c0_i32 : i32
    %1 = arith.extui %0 : i1 to i32
    %c0_i32_0 = arith.constant 0 : i32
    %2 = arith.cmpi ne, %1, %c0_i32_0 : i32
    scf.if %2 {
      %cst_10 = arith.constant 0.000000e+00 : f32
      %12 = vector.broadcast %cst_10 : f32 to vector<8x256xf32>
      %c0_11 = arith.constant 0 : index
      %c0_12 = arith.constant 0 : index
      %13 = vector.load %arg12[%c0_11, %c0_12] : memref<8x256xf32, #tpu.memory_space<vmem>>, vector<8x256xf32>
      tpu.vector_store %arg12[%c0_11, %c0_12], %12 {strides = array<i32>} : memref<8x256xf32, #tpu.memory_space<vmem>>, vector<8x256xf32>,
    } else {
    }
    %c0 = arith.constant 0 : index
    %c0_1 = arith.constant 0 : index
    %3 = vector.load %arg12[%c0, %c0_1] : memref<8x256xf32, #tpu.memory_space<vmem>>, vector<8x256xf32>
    %c0_2 = arith.constant 0 : index
    %c0_3 = arith.constant 0 : index
    %4 = vector.load %arg2[%c0_2, %c0_3] : memref<8x128xf32, #tpu.memory_space<vmem>>, vector<8x128xf32>
    %c0_4 = arith.constant 0 : index
    %c0_5 = arith.constant 0 : index
    %5 = vector.load %arg3[%c0_4, %c0_5] : memref<128x256xf32, #tpu.memory_space<vmem>>, vector<128x256xf32>
    %cst = arith.constant dense<0.000000e+00> : vector<8x256xf32>
    %6 = tpu.matmul %4, %5, %cst {dimension_numbers = #tpu.dot_dimension_numbers<[1], [0], [0], [1], [0, 0, 1, 1], [], []>} : vector<8x128xf32>, vector<128x256xf32>, vector<8x256xf32> -> vector<8x256xf32>
    %7 = arith.addf %3, %6 : vector<8x256xf32>
    %c0_6 = arith.constant 0 : index
    %c0_7 = arith.constant 0 : index
    %8 = vector.load %arg12[%c0_6, %c0_7] : memref<8x256xf32, #tpu.memory_space<vmem>>, vector<8x256xf32>
    tpu.vector_store %arg12[%c0_6, %c0_7], %7 {strides = array<i32>} : memref<8x256xf32, #tpu.memory_space<vmem>>, vector<8x256xf32>,
    %c0_i32_8 = arith.constant 0 : i32
    %9 = arith.cmpi eq, %arg1, %c0_i32_8 : i32
    %10 = arith.extui %9 : i1 to i32
    %c0_i32_9 = arith.constant 0 : i32
    %11 = arith.cmpi ne, %10, %c0_i32_9 : i32
    scf.if %11 {
      %c0_10 = arith.constant 0 : index
      %c0_11 = arith.constant 0 : index
      %12 = vector.load %arg12[%c0_10, %c0_11] : memref<8x256xf32, #tpu.memory_space<vmem>>, vector<8x256xf32>
      %c0_12 = arith.constant 0 : index
      %c0_13 = arith.constant 0 : index
      %13 = vector.load %arg4[%c0_12, %c0_13] : memref<1x256xf32, #tpu.memory_space<vmem>>, vector<1x256xf32>
      %14 = vector.broadcast %13 : vector<1x256xf32> to vector<8x256xf32>
      %15 = arith.addf %12, %14 : vector<8x256xf32>
      %cst_14 = arith.constant 0.000000e+00 : f32
      %16 = vector.broadcast %cst_14 : f32 to vector<8x256xf32>
      %17 = arith.cmpf oge, %15, %16 : vector<8x256xf32>
      %c0_15 = arith.constant 0 : index
      %c0_16 = arith.constant 0 : index
      %18 = vector.load %arg5[%c0_15, %c0_16] : memref<1x256xf32, #tpu.memory_space<vmem>>, vector<1x256xf32>
      %19 = vector.broadcast %18 : vector<1x256xf32> to vector<8x256xf32>
      %20 = arith.mulf %19, %15 : vector<8x256xf32>
      %21 = arith.select %17, %15, %20 : vector<8x256xi1>, vector<8x256xf32>
      %c0_17 = arith.constant 0 : index
      %c0_18 = arith.constant 0 : index
      %22 = vector.load %arg6[%c0_17, %c0_18] : memref<256x256xf32, #tpu.memory_space<vmem>>, vector<256x256xf32>
      %cst_19 = arith.constant dense<0.000000e+00> : vector<8x256xf32>
      %23 = tpu.matmul %21, %22, %cst_19 {dimension_numbers = #tpu.dot_dimension_numbers<[1], [0], [0], [1], [0, 0, 1, 1], [], []>} : vector<8x256xf32>, vector<256x256xf32>, vector<8x256xf32> -> vector<8x256xf32>
      %c0_20 = arith.constant 0 : index
      %c0_21 = arith.constant 0 : index
      %24 = vector.load %arg7[%c0_20, %c0_21] : memref<1x256xf32, #tpu.memory_space<vmem>>, vector<1x256xf32>
      %25 = vector.broadcast %24 : vector<1x256xf32> to vector<8x256xf32>
      %26 = arith.addf %23, %25 : vector<8x256xf32>
      %cst_22 = arith.constant 0.000000e+00 : f32
      %27 = vector.broadcast %cst_22 : f32 to vector<8x256xf32>
      %28 = arith.cmpf oge, %26, %27 : vector<8x256xf32>
      %c0_23 = arith.constant 0 : index
      %c0_24 = arith.constant 0 : index
      %29 = vector.load %arg8[%c0_23, %c0_24] : memref<1x256xf32, #tpu.memory_space<vmem>>, vector<1x256xf32>
      %30 = vector.broadcast %29 : vector<1x256xf32> to vector<8x256xf32>
      %31 = arith.mulf %30, %26 : vector<8x256xf32>
      %32 = arith.select %28, %26, %31 : vector<8x256xi1>, vector<8x256xf32>
      %c0_25 = arith.constant 0 : index
      %c0_26 = arith.constant 0 : index
      %33 = vector.load %arg9[%c0_25, %c0_26] : memref<256x128xf32, #tpu.memory_space<vmem>>, vector<256x128xf32>
      %cst_27 = arith.constant dense<0.000000e+00> : vector<8x128xf32>
      %34 = tpu.matmul %32, %33, %cst_27 {dimension_numbers = #tpu.dot_dimension_numbers<[1], [0], [0], [1], [0, 0, 1, 1], [], []>} : vector<8x256xf32>, vector<256x128xf32>, vector<8x128xf32> -> vector<8x128xf32>
      %c0_28 = arith.constant 0 : index
      %c0_29 = arith.constant 0 : index
      %35 = vector.load %arg10[%c0_28, %c0_29] : memref<1x128xf32, #tpu.memory_space<vmem>>, vector<1x128xf32>
      %36 = vector.broadcast %35 : vector<1x128xf32> to vector<8x128xf32>
      %37 = arith.addf %34, %36 : vector<8x128xf32>
      %38 = arith.mulf %37, %37 : vector<8x128xf32>
      %cst_30 = arith.constant dense<0.000000e+00> : vector<8xf32>
      %39 = vector.multi_reduction <add>, %38, %cst_30 [1] : vector<8x128xf32> to vector<8xf32>
      %40 = vector.shape_cast %39 : vector<8xf32> to vector<8x1xf32>
      %cst_31 = arith.constant 1.000000e-24 : f32
      %41 = vector.broadcast %cst_31 : f32 to vector<8x1xf32>
      %42 = arith.maximumf %40, %41 : vector<8x1xf32>
      %43 = math.rsqrt %42 : vector<8x1xf32>
      %44 = vector.broadcast %43 : vector<8x1xf32> to vector<8x128xf32>
      %45 = arith.mulf %37, %44 : vector<8x128xf32>
      %c0_32 = arith.constant 0 : index
      %c0_33 = arith.constant 0 : index
      %46 = vector.load %arg11[%c0_32, %c0_33] : memref<8x128xf32, #tpu.memory_space<vmem>>, vector<8x128xf32>
      tpu.vector_store %arg11[%c0_32, %c0_33], %45 {strides = array<i32>} : memref<8x128xf32, #tpu.memory_space<vmem>>, vector<8x128xf32>,
    } else {
    }
    return
  }
  func.func @transform_0(%arg0: i32, %arg1: i32) -> (i32, i32) {
    %c0_i32 = arith.constant 0 : i32
    return %arg0, %arg1 : i32, i32
  }
  func.func @transform_1(%arg0: i32, %arg1: i32) -> (i32, i32) {
    %c0_i32 = arith.constant 0 : i32
    %c0_i32_0 = arith.constant 0 : i32
    return %arg1, %c0_i32 : i32, i32
  }
  func.func @transform_2(%arg0: i32, %arg1: i32) -> (i32, i32) {
    %c0_i32 = arith.constant 0 : i32
    %c0_i32_0 = arith.constant 0 : i32
    %c0_i32_1 = arith.constant 0 : i32
    return %c0_i32, %c0_i32_0 : i32, i32
  }
  func.func @transform_3(%arg0: i32, %arg1: i32) -> (i32, i32) {
    %c0_i32 = arith.constant 0 : i32
    %c0_i32_0 = arith.constant 0 : i32
    %c0_i32_1 = arith.constant 0 : i32
    return %c0_i32, %c0_i32_0 : i32, i32
  }
  func.func @transform_4(%arg0: i32, %arg1: i32) -> (i32, i32) {
    %c0_i32 = arith.constant 0 : i32
    %c0_i32_0 = arith.constant 0 : i32
    %c0_i32_1 = arith.constant 0 : i32
    return %c0_i32, %c0_i32_0 : i32, i32
  }
  func.func @transform_5(%arg0: i32, %arg1: i32) -> (i32, i32) {
    %c0_i32 = arith.constant 0 : i32
    %c0_i32_0 = arith.constant 0 : i32
    %c0_i32_1 = arith.constant 0 : i32
    return %c0_i32, %c0_i32_0 : i32, i32
  }
  func.func @transform_6(%arg0: i32, %arg1: i32) -> (i32, i32) {
    %c0_i32 = arith.constant 0 : i32
    %c0_i32_0 = arith.constant 0 : i32
    %c0_i32_1 = arith.constant 0 : i32
    return %c0_i32, %c0_i32_0 : i32, i32
  }
  func.func @transform_7(%arg0: i32, %arg1: i32) -> (i32, i32) {
    %c0_i32 = arith.constant 0 : i32
    %c0_i32_0 = arith.constant 0 : i32
    %c0_i32_1 = arith.constant 0 : i32
    return %c0_i32, %c0_i32_0 : i32, i32
  }
  func.func @transform_8(%arg0: i32, %arg1: i32) -> (i32, i32) {
    %c0_i32 = arith.constant 0 : i32
    %c0_i32_0 = arith.constant 0 : i32
    %c0_i32_1 = arith.constant 0 : i32
    return %c0_i32, %c0_i32_0 : i32, i32
  }
  func.func @transform_9(%arg0: i32, %arg1: i32) -> (i32, i32) {
    %c0_i32 = arith.constant 0 : i32
    %c0_i32_0 = arith.constant 0 : i32
    return %arg0, %c0_i32 : i32, i32
  }
}

</mosaic_0001>

<bundles_post_ra>
// kernel: shallownet_forward.1
= control target key start
LH: loop header
LB: loop body
LE: loop exit
PB: predicated region body
PF: predicated region fallthrough
CT: control target
= control target key end

     0   :  { %v509_v3 = vmov 0.0   ;;  %s965_s1 = inlined_call_operand.vmem [shape: f32[128,256], index: 1, kind: input, shape index: {}]   ;;  %s966_s4 = inlined_call_operand.vmem [shape: f32[256,256], index: 4, kind: input, shape index: {}]   ;;  %s967_s0 = inlined_call_operand.vmem [shape: f32[8,128], index: 0, kind: input, shape index: {}]   ;;  %s968_s7 = inlined_call_operand.vmem [shape: f32[256,128], index: 7, kind: input, shape index: {}]   ;;  %s969_s2 = inlined_call_operand.vmem [shape: f32[1,256], index: 2, kind: input, shape index: {}]   ;;  %s970_s3 = inlined_call_operand.vmem [shape: f32[1,256], index: 3, kind: input, shape index: {}]   ;;  %s971_s5 = inlined_call_operand.vmem [shape: f32[1,256], index: 5, kind: input, shape index: {}]   ;;  %s972_s6 = inlined_call_operand.vmem [shape: f32[1,256], index: 6, kind: input, shape index: {}]   ;;  %s973_s8 = inlined_call_operand.vmem [shape: f32[1,128], index: 8, kind: input, shape index: {}]   ;;  %s974_s9 = inlined_call_operand.vmem [shape: f32[8,128], index: 9, kind: output, shape index: {}]  }
   0x1   :  { %v72_v0 = vld [vmem:[%s965_s1 + $0xf8] sm:$0xff]  ;;  %v71_v1 = vld [vmem:[%s965_s1 + $0xf0] sm:$0xff]  ;;  %v70_v2 = vld [vmem:[%s965_s1 + $0xe8] sm:$0xff]  ;;  %137 = vmatprep.mubr.f32.mxu0 %v509_v3 }
   0x2   :  { %73 = vmatprep.subr.mxu0 %v72_v0  ;;  %v69_v4 = vld [vmem:[%s965_s1 + $0xe0] sm:$0xff]  ;;  %v68_v5 = vld [vmem:[%s965_s1 + $0xd8] sm:$0xff]  ;;  %v67_v6 = vld [vmem:[%s965_s1 + $0xd0] sm:$0xff] }
   0x3   :  { %74 = vmatpush1.msra.mxu0 %v71_v1  ;;  %v66_v7 = vld [vmem:[%s965_s1 + $0xc8] sm:$0xff]  ;;  %v65_v8 = vld [vmem:[%s965_s1 + $0xc0] sm:$0xff]  ;;  %v64_v9 = vld [vmem:[%s965_s1 + $0xb8] sm:$0xff] }
   0x4   :  { %75 = vmatprep.subr.mxu0 %v70_v2  ;;  %v63_v10 = vld [vmem:[%s965_s1 + $0xb0] sm:$0xff]  ;;  %v62_v11 = vld [vmem:[%s965_s1 + $0xa8] sm:$0xff]  ;;  %v61_v12 = vld [vmem:[%s965_s1 + $0xa0] sm:$0xff] }
   0x5   :  { %76 = vmatpush1.msra.mxu0 %v69_v4  ;;  %v60_v13 = vld [vmem:[%s965_s1 + $0x98] sm:$0xff]  ;;  %v59_v14 = vld [vmem:[%s965_s1 + $0x90] sm:$0xff]  ;;  %v214_v17 = vld [vmem:[%s966_s4 + $0xe8] sm:$0xff] }
   0x6   :  { %77 = vmatprep.subr.mxu0 %v68_v5  ;;  %v216_v15 = vld [vmem:[%s966_s4 + $0xf8] sm:$0xff]  ;;  %v215_v16 = vld [vmem:[%s966_s4 + $0xf0] sm:$0xff]  ;;  %v58_v18 = vld [vmem:[%s965_s1 + $0x88] sm:$0xff] }
   0x7   :  { %78 = vmatpush1.msra.mxu0 %v67_v6  ;;  %261 = vmatprep.subr.mxu1 %v216_v15  ;;  %v213_v19 = vld [vmem:[%s966_s4 + $0xe0] sm:$0xff]  ;;  %v212_v21 = vld [vmem:[%s966_s4 + $0xd8] sm:$0xff]  ;;  %v211_v23 = vld [vmem:[%s966_s4 + $0xd0] sm:$0xff] }
   0x8   :  { %79 = vmatprep.subr.mxu0 %v66_v7  ;;  %v57_v20 = vld [vmem:[%s965_s1 + $0x80] sm:$0xff]  ;;  %262 = vmatpush1.msra.mxu1 %v215_v16  ;;  %v56_v22 = vld [vmem:[%s965_s1 + $0x78] sm:$0xff]  ;;  %v55_v24 = vld [vmem:[%s965_s1 + $0x70] sm:$0xff] }
   0x9   :  { %80 = vmatpush1.msra.mxu0 %v65_v8  ;;  %263 = vmatprep.subr.mxu1 %v214_v17  ;;  %v210_v25 = vld [vmem:[%s966_s4 + $0xc8] sm:$0xff]  ;;  %v209_v27 = vld [vmem:[%s966_s4 + $0xc0] sm:$0xff]  ;;  %v208_v29 = vld [vmem:[%s966_s4 + $0xb8] sm:$0xff] }
   0xa   :  { %81 = vmatprep.subr.mxu0 %v64_v9  ;;  %264 = vmatpush1.msra.mxu1 %v213_v19  ;;  %v54_v26 = vld [vmem:[%s965_s1 + $0x68] sm:$0xff]  ;;  %v53_v28 = vld [vmem:[%s965_s1 + $0x60] sm:$0xff]  ;;  %v52_v30 = vld [vmem:[%s965_s1 + $0x58] sm:$0xff] }
   0xb   :  { %82 = vmatpush1.msra.mxu0 %v63_v10  ;;  %265 = vmatprep.subr.mxu1 %v212_v21  ;;  %v207_v31 = vld [vmem:[%s966_s4 + $0xb0] sm:$0xff]  ;;  %v206_v33 = vld [vmem:[%s966_s4 + $0xa8] sm:$0xff]  ;;  %v205_v35 = vld [vmem:[%s966_s4 + $0xa0] sm:$0xff] }
   0xc   :  { %83 = vmatprep.subr.mxu0 %v62_v11  ;;  %266 = vmatpush1.msra.mxu1 %v211_v23  ;;  %v51_v32 = vld [vmem:[%s965_s1 + $0x50] sm:$0xff]  ;;  %v50_v34 = vld [vmem:[%s965_s1 + $0x48] sm:$0xff]  ;;  %v49_v36 = vld [vmem:[%s965_s1 + $0x40] sm:$0xff] }
   0xd   :  { %84 = vmatpush1.msra.mxu0 %v61_v12  ;;  %267 = vmatprep.subr.mxu1 %v210_v25  ;;  %v204_v37 = vld [vmem:[%s966_s4 + $0x98] sm:$0xff]  ;;  %v203_v39 = vld [vmem:[%s966_s4 + $0x90] sm:$0xff]  ;;  %v202_v41 = vld [vmem:[%s966_s4 + $0x88] sm:$0xff] }
   0xe   :  { %85 = vmatprep.subr.mxu0 %v60_v13  ;;  %268 = vmatpush1.msra.mxu1 %v209_v27  ;;  %v48_v38 = vld [vmem:[%s965_s1 + $0x38] sm:$0xff]  ;;  %v47_v40 = vld [vmem:[%s965_s1 + $0x30] sm:$0xff]  ;;  %v46_v42 = vld [vmem:[%s965_s1 + $0x28] sm:$0xff] }
   0xf   :  { %86 = vmatpush1.msra.mxu0 %v59_v14  ;;  %269 = vmatprep.subr.mxu1 %v208_v29  ;;  %v201_v43 = vld [vmem:[%s966_s4 + $0x80] sm:$0xff]  ;;  %v200_v45 = vld [vmem:[%s966_s4 + $0x78] sm:$0xff]  ;;  %v199_v47 = vld [vmem:[%s966_s4 + $0x70] sm:$0xff] }
  0x10   :  { %87 = vmatprep.subr.mxu0 %v58_v18  ;;  %270 = vmatpush1.msra.mxu1 %v207_v31  ;;  %v45_v44 = vld [vmem:[%s965_s1 + $0x20] sm:$0xff]  ;;  %v44_v46 = vld [vmem:[%s965_s1 + $0x18] sm:$0xff]  ;;  %v43_v48 = vld [vmem:[%s965_s1 + $0x10] sm:$0xff] }
  0x11   :  { %88 = vmatpush1.msra.mxu0 %v57_v20  ;;  %271 = vmatprep.subr.mxu1 %v206_v33  ;;  %v198_v49 = vld [vmem:[%s966_s4 + $0x68] sm:$0xff]  ;;  %v197_v51 = vld [vmem:[%s966_s4 + $0x60] sm:$0xff]  ;;  %v196_v53 = vld [vmem:[%s966_s4 + $0x58] sm:$0xff] }
  0x12   :  { %89 = vmatprep.subr.mxu0 %v56_v22  ;;  %272 = vmatpush1.msra.mxu1 %v205_v35  ;;  %v42_v50 = vld [vmem:[%s965_s1 + $0x8] sm:$0xff]  ;;  %v41_v52 = vld [vmem:[%s965_s1] sm:$0xff]  ;;  %v195_v55 = vld [vmem:[%s966_s4 + $0x50] sm:$0xff] }
  0x13   :  { %90 = vmatpush1.msra.mxu0 %v55_v24  ;;  %273 = vmatprep.subr.mxu1 %v204_v37  ;;  %v40_v54 = vld [vmem:[%s967_s0] sm:$0xff]  ;;  %v194_v56 = vld [vmem:[%s966_s4 + $0x48] sm:$0xff]  ;;  %v192_v58 = vld [vmem:[%s966_s4 + $0x38] sm:$0xff] }
  0x14   :  { %91 = vmatprep.subr.mxu0 %v54_v26  ;;  %274 = vmatpush1.msra.mxu1 %v203_v39  ;;  %v193_v57 = vld [vmem:[%s966_s4 + $0x40] sm:$0xff]  ;;  %v191_v59 = vld [vmem:[%s966_s4 + $0x30] sm:$0xff]  ;;  %v190_v60 = vld [vmem:[%s966_s4 + $0x28] sm:$0xff] }
  0x15   :  { %92 = vmatpush1.msra.mxu0 %v53_v28  ;;  %275 = vmatprep.subr.mxu1 %v202_v41  ;;  %v189_v61 = vld [vmem:[%s966_s4 + $0x20] sm:$0xff]  ;;  %v188_v62 = vld [vmem:[%s966_s4 + $0x18] sm:$0xff]  ;;  %v187_v63 = vld [vmem:[%s966_s4 + $0x10] sm:$0xff] }
  0x16   :  { %93 = vmatprep.subr.mxu0 %v52_v30  ;;  %276 = vmatpush1.msra.mxu1 %v201_v43  ;;  %v186_v0 = vld [vmem:[%s966_s4 + $0x8] sm:$0xff]  ;;  %v185_v1 = vld [vmem:[%s966_s4] sm:$0xff]  ;;  %v248_v2 = vld [vmem:[%s966_s4 + $0x1f8] sm:$0xff] }
  0x17   :  { %94 = vmatpush1.msra.mxu0 %v51_v32  ;;  %277 = vmatprep.subr.mxu1 %v200_v45  ;;  %v247_v3 = vld [vmem:[%s966_s4 + $0x1f0] sm:$0xff]  ;;  %v246_v4 = vld [vmem:[%s966_s4 + $0x1e8] sm:$0xff]  ;;  %v245_v5 = vld [vmem:[%s966_s4 + $0x1e0] sm:$0xff] }
  0x18   :  { %95 = vmatprep.subr.mxu0 %v50_v34  ;;  %278 = vmatpush1.msra.mxu1 %v199_v47  ;;  %v244_v6 = vld [vmem:[%s966_s4 + $0x1d8] sm:$0xff]  ;;  %v243_v7 = vld [vmem:[%s966_s4 + $0x1d0] sm:$0xff]  ;;  %v242_v8 = vld [vmem:[%s966_s4 + $0x1c8] sm:$0xff] }
  0x19   :  { %96 = vmatpush1.msra.mxu0 %v49_v36  ;;  %279 = vmatprep.subr.mxu1 %v198_v49  ;;  %v241_v9 = vld [vmem:[%s966_s4 + $0x1c0] sm:$0xff]  ;;  %v240_v10 = vld [vmem:[%s966_s4 + $0x1b8] sm:$0xff]  ;;  %v239_v11 = vld [vmem:[%s966_s4 + $0x1b0] sm:$0xff] }
  0x1a   :  { %97 = vmatprep.subr.mxu0 %v48_v38  ;;  %280 = vmatpush1.msra.mxu1 %v197_v51  ;;  %v238_v12 = vld [vmem:[%s966_s4 + $0x1a8] sm:$0xff]  ;;  %v237_v13 = vld [vmem:[%s966_s4 + $0x1a0] sm:$0xff]  ;;  %v236_v14 = vld [vmem:[%s966_s4 + $0x198] sm:$0xff] }
  0x1b   :  { %98 = vmatpush1.msra.mxu0 %v47_v40  ;;  %281 = vmatprep.subr.mxu1 %v196_v53  ;;  %v235_v15 = vld [vmem:[%s966_s4 + $0x190] sm:$0xff]  ;;  %v234_v16 = vld [vmem:[%s966_s4 + $0x188] sm:$0xff]  ;;  %v233_v17 = vld [vmem:[%s966_s4 + $0x180] sm:$0xff] }
  0x1c   :  { %99 = vmatprep.subr.mxu0 %v46_v42  ;;  %282 = vmatpush1.msra.mxu1 %v195_v55  ;;  %v232_v18 = vld [vmem:[%s966_s4 + $0x178] sm:$0xff]  ;;  %v231_v19 = vld [vmem:[%s966_s4 + $0x170] sm:$0xff]  ;;  %v230_v20 = vld [vmem:[%s966_s4 + $0x168] sm:$0xff] }
  0x1d   :  { %100 = vmatpush1.msra.mxu0 %v45_v44  ;;  %283 = vmatprep.subr.mxu1 %v194_v56  ;;  %v229_v21 = vld [vmem:[%s966_s4 + $0x160] sm:$0xff]  ;;  %v228_v22 = vld [vmem:[%s966_s4 + $0x158] sm:$0xff]  ;;  %v227_v23 = vld [vmem:[%s966_s4 + $0x150] sm:$0xff] }
  0x1e   :  { %101 = vmatprep.subr.mxu0 %v44_v46  ;;  %284 = vmatpush1.msra.mxu1 %v193_v57  ;;  %v226_v24 = vld [vmem:[%s966_s4 + $0x148] sm:$0xff]  ;;  %v225_v25 = vld [vmem:[%s966_s4 + $0x140] sm:$0xff]  ;;  %v224_v26 = vld [vmem:[%s966_s4 + $0x138] sm:$0xff]  ;;  %v155_v57 = vlaneseq }
  0x1f   :  { %102 = vmatpush1.msra.mxu0 %v43_v48  ;;  %285 = vmatprep.subr.mxu1 %v192_v58  ;;  %v223_v27 = vld [vmem:[%s966_s4 + $0x130] sm:$0xff]  ;;  %v222_v28 = vld [vmem:[%s966_s4 + $0x128] sm:$0xff]  ;;  %v221_v29 = vld [vmem:[%s966_s4 + $0x120] sm:$0xff] }
  0x20   :  { %103 = vmatprep.subr.mxu0 %v42_v50  ;;  %286 = vmatpush1.msra.mxu1 %v191_v59  ;;  %v220_v30 = vld [vmem:[%s966_s4 + $0x118] sm:$0xff]  ;;  %v219_v31 = vld [vmem:[%s966_s4 + $0x110] sm:$0xff]  ;;  %v218_v32 = vld [vmem:[%s966_s4 + $0x108] sm:$0xff]  ;;  %v156_v58 = vshrl.u32 %v155_v57, 7 }
  0x21   :  { %104 = vmatpush1.msra.mxu0 %v41_v52  ;;  %287 = vmatprep.subr.mxu1 %v190_v60  ;;  %v217_v33 = vld [vmem:[%s966_s4 + $0x100] sm:$0xff]  ;;  %v381_v34 = vld [vmem:[%s968_s7 + $0xf8] sm:$0xff]  ;;  %v380_v36 = vld [vmem:[%s968_s7 + $0xf0] sm:$0xff] }
  0x22   :  { %138 = vmatmul.mubr.f32.vlgmr.msra.gmra.mxu0 %v40_v54  ;;  %288 = vmatpush1.msra.mxu1 %v189_v61  ;;  %v365_v35 = vld [vmem:[%s968_s7 + $0x78] sm:$0xff]  ;;  %v364_v37 = vld [vmem:[%s968_s7 + $0x70] sm:$0xff]  ;;  %v379_v38 = vld [vmem:[%s968_s7 + $0xe8] sm:$0xff]  ;;  %v157_v59 = vsub.s32 0, %v156_v58  ;;  %v161_v61 = vsub.s32 1, %v156_v58 }
  0x23   :  { %289 = vmatprep.subr.mxu1 %v188_v62  ;;  %471 = vmatprep.subr.mxu0 %v381_v34  ;;  %v363_v39 = vld [vmem:[%s968_s7 + $0x68] sm:$0xff]  ;;  %v378_v40 = vld [vmem:[%s968_s7 + $0xe0] sm:$0xff]  ;;  %v377_v42 = vld [vmem:[%s968_s7 + $0xd8] sm:$0xff] }
  0x24   :  { %290 = vmatpush1.msra.mxu1 %v187_v63  ;;  %472 = vmatpush3.msra.mxu0 %v365_v35  ;;  %v362_v41 = vld [vmem:[%s968_s7 + $0x60] sm:$0xff]  ;;  %v361_v43 = vld [vmem:[%s968_s7 + $0x58] sm:$0xff]  ;;  %v376_v44 = vld [vmem:[%s968_s7 + $0xd0] sm:$0xff] }
  0x25   :  { %291 = vmatprep.subr.mxu1 %v186_v0  ;;  %473 = vmatprep.subr.mxu0 %v380_v36  ;;  %v360_v45 = vld [vmem:[%s968_s7 + $0x50] sm:$0xff]  ;;  %v375_v46 = vld [vmem:[%s968_s7 + $0xc8] sm:$0xff]  ;;  %v374_v48 = vld [vmem:[%s968_s7 + $0xc0] sm:$0xff] }
  0x26   :  { %292 = vmatpush1.msra.mxu1 %v185_v1  ;;  %474 = vmatpush3.msra.mxu0 %v364_v37  ;;  %v359_v47 = vld [vmem:[%s968_s7 + $0x48] sm:$0xff]  ;;  %v358_v49 = vld [vmem:[%s968_s7 + $0x40] sm:$0xff]  ;;  %v373_v50 = vld [vmem:[%s968_s7 + $0xb8] sm:$0xff] }
  0x27   :  { %293 = vmatprep.subr.mxu1 %v248_v2  ;;  %475 = vmatprep.subr.mxu0 %v379_v38  ;;  %v357_v51 = vld [vmem:[%s968_s7 + $0x38] sm:$0xff]  ;;  %v372_v52 = vld [vmem:[%s968_s7 + $0xb0] sm:$0xff]  ;;  %v371_v54 = vld [vmem:[%s968_s7 + $0xa8] sm:$0xff] }
  0x28   :  { %294 = vmatpush2.msra.mxu1 %v247_v3  ;;  %476 = vmatpush3.msra.mxu0 %v363_v39  ;;  %v356_v53 = vld [vmem:[%s968_s7 + $0x30] sm:$0xff]  ;;  %v355_v55 = vld [vmem:[%s968_s7 + $0x28] sm:$0xff]  ;;  %v370_v56 = vld [vmem:[%s968_s7 + $0xa0] sm:$0xff] }
  0x29   :  { %295 = vmatprep.subr.mxu1 %v246_v4  ;;  %477 = vmatprep.subr.mxu0 %v378_v40  ;;  %v153_v60 = vld [vmem:[%s969_s2] sm:$0x3] }
  0x2a   :  { %296 = vmatpush2.msra.mxu1 %v245_v5  ;;  %478 = vmatpush3.msra.mxu0 %v362_v41  ;;  %v158_v62 = vrot.slane %v153_v60, %v157_v59  ;;  %v169_v63 = vld [vmem:[%s970_s3] sm:$0x3]  ;;  %v162_v0 = vrot.slane %v153_v60, %v161_v61 }
  0x2b   :  { %297 = vmatprep.subr.mxu1 %v244_v6  ;;  %479 = vmatprep.subr.mxu0 %v377_v42  ;;  %v174_v2 = vrot.slane %v169_v63, %v157_v59  ;;  %v178_v4 = vrot.slane %v169_v63, %v161_v61  ;;  %v470_v36 = vld [vmem:[%s973_s8] ss:$0 sm:$0xff] }
  0x2c   :  { %298 = vmatpush2.msra.mxu1 %v243_v7  ;;  %480 = vmatpush3.msra.mxu0 %v361_v43 }
  0x2d   :  { %299 = vmatprep.subr.mxu1 %v242_v8  ;;  %481 = vmatprep.subr.mxu0 %v376_v44 }
  0x2e   :  { %300 = vmatpush2.msra.mxu1 %v241_v9  ;;  %482 = vmatpush3.msra.mxu0 %v360_v45 }
  0x2f   :  { %301 = vmatprep.subr.mxu1 %v240_v10  ;;  %483 = vmatprep.subr.mxu0 %v375_v46 }
  0x30   :  { %302 = vmatpush2.msra.mxu1 %v239_v11  ;;  %484 = vmatpush3.msra.mxu0 %v359_v47  ;;  %v354_v11 = vld [vmem:[%s968_s7 + $0x20] sm:$0xff] }
  0x31   :  { %303 = vmatprep.subr.mxu1 %v238_v12  ;;  %485 = vmatprep.subr.mxu0 %v374_v48  ;;  %v369_v12 = vld [vmem:[%s968_s7 + $0x98] sm:$0xff] }
  0x32   :  { %304 = vmatpush2.msra.mxu1 %v237_v13  ;;  %486 = vmatpush3.msra.mxu0 %v358_v49  ;;  %v353_v13 = vld [vmem:[%s968_s7 + $0x18] sm:$0xff] }
  0x33   :  { %305 = vmatprep.subr.mxu1 %v236_v14  ;;  %487 = vmatprep.subr.mxu0 %v373_v50  ;;  %v368_v14 = vld [vmem:[%s968_s7 + $0x90] sm:$0xff] }
  0x34   :  { %306 = vmatpush2.msra.mxu1 %v235_v15  ;;  %488 = vmatpush3.msra.mxu0 %v357_v51  ;;  %v352_v15 = vld [vmem:[%s968_s7 + $0x10] sm:$0xff] }
  0x35   :  { %307 = vmatprep.subr.mxu1 %v234_v16  ;;  %489 = vmatprep.subr.mxu0 %v372_v52  ;;  %v367_v16 = vld [vmem:[%s968_s7 + $0x88] sm:$0xff] }
  0x36   :  { %308 = vmatpush2.msra.mxu1 %v233_v17  ;;  %490 = vmatpush3.msra.mxu0 %v356_v53  ;;  %v351_v17 = vld [vmem:[%s968_s7 + $0x8] sm:$0xff] }
  0x37   :  { %309 = vmatprep.subr.mxu1 %v232_v18  ;;  %491 = vmatprep.subr.mxu0 %v371_v54  ;;  %v366_v18 = vld [vmem:[%s968_s7 + $0x80] sm:$0xff] }
  0x38   :  { %310 = vmatpush2.msra.mxu1 %v231_v19  ;;  %492 = vmatpush3.msra.mxu0 %v355_v55  ;;  %v350_v19 = vld [vmem:[%s968_s7] sm:$0xff] }
  0x39   :  { %311 = vmatprep.subr.mxu1 %v230_v20  ;;  %493 = vmatprep.subr.mxu0 %v370_v56  ;;  %v249_v20 = vld [vmem:[%s971_s5] sm:$0x3] }
  0x3a   :  { %312 = vmatpush2.msra.mxu1 %v229_v21  ;;  %494 = vmatpush3.msra.mxu0 %v354_v11  ;;  %v254_v21 = vrot.slane %v249_v20, %v157_v59 }
  0x3b   :  { %313 = vmatprep.subr.mxu1 %v228_v22  ;;  %495 = vmatprep.subr.mxu0 %v369_v12  ;;  %v334_v22 = vld [vmem:[%s972_s6] sm:$0x3] }
  0x3c   :  { %314 = vmatpush2.msra.mxu1 %v227_v23  ;;  %496 = vmatpush3.msra.mxu0 %v353_v13  ;;  %v258_v23 = vrot.slane %v249_v20, %v161_v61 }
  0x3d   :  { %315 = vmatprep.subr.mxu1 %v226_v24  ;;  %497 = vmatprep.subr.mxu0 %v368_v14 }
  0x3e   :  { %316 = vmatpush2.msra.mxu1 %v225_v25  ;;  %498 = vmatpush3.msra.mxu0 %v352_v15  ;;  %v339_v25 = vrot.slane %v334_v22, %v157_v59 }
  0x3f   :  { %317 = vmatprep.subr.mxu1 %v224_v26  ;;  %499 = vmatprep.subr.mxu0 %v367_v16 }
  0x40   :  { %318 = vmatpush2.msra.mxu1 %v223_v27  ;;  %500 = vmatpush3.msra.mxu0 %v351_v17  ;;  %v343_v27 = vrot.slane %v334_v22, %v161_v61 }
  0x41   :  { %319 = vmatprep.subr.mxu1 %v222_v28  ;;  %501 = vmatprep.subr.mxu0 %v366_v18 }
  0x42   :  { %320 = vmatpush2.msra.mxu1 %v221_v29  ;;  %502 = vmatpush3.msra.mxu0 %v350_v19 }
  0x43   :  { %321 = vmatprep.subr.mxu1 %v220_v30 }
  0x44   :  { %322 = vmatpush2.msra.mxu1 %v219_v31 }
  0x45   :  { %323 = vmatprep.subr.mxu1 %v218_v32 }
  0x46   :  { %324 = vmatpush2.msra.mxu1 %v217_v33 }
  0xe2   :  { %v139_v1 = vpop.f32.mrf.mxu0 }
  0xe3   :  { %v165_v3 = vadd.f32 %v158_v62, %v139_v1 }
  0xe4   :  { %v141_v5 = vpop.f32.mrf.mxu0 }
  0xe5   :  { %v166_v6 = vadd.f32 %v162_v0, %v141_v5  ;;  %v181_v7 = vmul.f32 %v174_v2, %v165_v3  ;;  %vm167_vm1 = vcmp.ge.f32.partialorder %v165_v3, 0.0 }
  0xe7   :  { %vm168_vm0 = vcmp.ge.f32.partialorder %v166_v6, 0.0  ;;  %v182_v8 = vmul.f32 %v178_v4, %v166_v6  ;;  %v183_v10 = vsel %vm167_vm1, %v165_v3, %v181_v7 }
  0xe9   :  { %v184_v9 = vsel %vm168_vm0, %v166_v6, %v182_v8 }
  0xea   :  { %325 = vmatprep.mubr.f32.mxu1 %v184_v9 }
  0xeb   :  { %326 = vmatmul.mubr.f32.vlgmr.msra.gmra.mxu1 %v183_v10 }
 0x1ab   :  { %v327_v24 = vpop.f32.mrf.mxu1 }
 0x1ac   :  { %v328_v26 = vadd.f32 %v327_v24, %v254_v21 }
 0x1ad   :  { %v329_v28 = vpop.f32.mrf.mxu1 }
 0x1ae   :  { %v330_v29 = vadd.f32 %v329_v28, %v258_v23  ;;  %v346_v30 = vmul.f32 %v339_v25, %v328_v26  ;;  %vm332_vm2 = vcmp.ge.f32.partialorder %v328_v26, 0.0 }
 0x1b0   :  { %v347_v31 = vmul.f32 %v343_v27, %v330_v29  ;;  %vm333_vm3 = vcmp.ge.f32.partialorder %v330_v29, 0.0  ;;  %v348_v33 = vsel %vm332_vm2, %v328_v26, %v346_v30 }
 0x1b2   :  { %v349_v32 = vsel %vm333_vm3, %v330_v29, %v347_v31 }
 0x1b3   :  { %453 = vmatprep.mubr.f32.mxu0 %v349_v32 }
 0x1b4   :  { %454 = vmatmul.mubr.f32.vlgmr.msra.gmra.mxu0 %v348_v33 }
 0x274   :  { %v503_v34 = vpop.f32.mrf.mxu0 }
 0x276   :  { %v504_v35 = vpop.f32.mrf.mxu0 }
 0x277   :  { %v505_v37 = vadd.f32 %v504_v35, %v503_v34 }
 0x279   :  { %v456_v38 = vadd.f32 %v505_v37, %v470_v36 }
 0x27b   :  { %v459_v39 = vmul.f32 %v456_v38, %v456_v38 }
 0x27d   :  { %460 = vadd.xlane.f32.xlu0 %v459_v39 }
 0x306   :  { %v461_v40 = vpop.xlane.xlu0 %460 }
 0x307   :  { %v462_v41 = vmax.f32 %v461_v40, 1e-24 }
 0x309   :  { %507 = vrsqrt.f32 %v462_v41 }
 0x316   :  { %v508_v42 = vpop.eup %507 }
 0x317   :  { %v464_v43 = vmul.f32 %v508_v42, %v456_v38 }
 0x319   :  { %465 = vst [vmem:[%s974_s9] sm:$0xff] %v464_v43 }

</bundles_post_ra>
